<compile_context>
chip_gen: v5e
topology: v5e:2x2
jax: 0.10.0
libtpu: 0.0.40
codegen_flags: <defaults>
</compile_context>

<pallas_src>
import math
import functools

import jax
import jax.numpy as jnp
from jax.experimental import pallas as pl
from jax.experimental.pallas import tpu as pltpu


# ---------------------------------------------------------------------------
# Kernel
# ---------------------------------------------------------------------------
def _bert_cross_attn_kernel(h_ref, c_ref, mask_ref,
                            wq_ref, bq_ref, wk_ref, bk_ref, wv_ref, bv_ref,
                            ctx_out_ref, *scores_out_ref, g, d):
    # All refs arrive squeezed to their trailing dims (pl.Squeezed() lead dims).
    h = h_ref[...]                      # (TQ, H)    bf16
    c = c_ref[...]                      # (Sk, Dctx) bf16

    # Grouped projections: full G*d output lanes on the MXU, f32 accumulation,
    # f32 bias.  wq/bq were pre-scaled by 1/sqrt(d) in the packer.
    q = jnp.dot(h, wq_ref[...], preferred_element_type=jnp.float32) + bq_ref[...]   # (TQ, G*d)
    k = jnp.dot(c, wk_ref[...], preferred_element_type=jnp.float32) + bk_ref[...]   # (Sk, G*d)
    v = jnp.dot(c, wv_ref[...], preferred_element_type=jnp.float32) + bv_ref[...]   # (Sk, G*d)

    tq = q.shape[0]
    sk = k.shape[0]

    # Split the G heads out for the batched score matmul: (T, G*d) -> (G, T, d).
    qh = q.astype(jnp.bfloat16).reshape(tq, g, d).transpose(1, 0, 2)
    kh = k.astype(jnp.bfloat16).reshape(sk, g, d).transpose(1, 0, 2)
    vh = v.astype(jnp.bfloat16).reshape(sk, g, d).transpose(1, 0, 2)

    # scores = (q / sqrt(d)) @ k^T + mask  (scale already folded into wq/bq).
    scores = jnp.einsum('gqd,gkd->gqk', qh, kh,
                        preferred_element_type=jnp.float32)            # (G, TQ, Sk) f32
    scores = scores + mask_ref[...]                                    # (1, Sk) broadcast

    if scores_out_ref:
        scores_out_ref[0][...] = scores.astype(scores_out_ref[0].dtype)

    # Numerically stable softmax in f32; reciprocal goes to the EUP slot.
    m = jnp.max(scores, axis=-1, keepdims=True)
    e = jnp.exp(scores - m)
    denom = jnp.sum(e, axis=-1, keepdims=True)
    probs = e * pl.reciprocal(denom, approx=True)

    # context = P @ V per head, then merge heads into the lane-dense layout.
    ctx = jnp.einsum('gqk,gkd->gqd', probs.astype(jnp.bfloat16), vh,
                     preferred_element_type=jnp.float32)               # (G, TQ, d)
    ctx_out_ref[...] = ctx.transpose(1, 0, 2).reshape(tq, g * d).astype(ctx_out_ref.dtype)


# ---------------------------------------------------------------------------
# Helpers
# ---------------------------------------------------------------------------
def _pick_head_group(num_heads, head_dim, target_lanes=256):
    """Largest head group G (dividing num_heads) whose merged ctx block is
    lane-dense (G*d % 128 == 0, or all heads in one group) and <= target_lanes.
    Note: on v5e a 128-lane target may be marginally better; 256 is the
    v6e/v7x sweet spot."""
    best = None
    for g in range(1, num_heads + 1):
        if num_heads % g:
            continue
        lanes = g * head_dim
        lane_ok = (lanes % 128 == 0) or (g == num_heads)
        if not lane_ok or lanes > target_lanes:
            continue
        best = g
    return best if best is not None else num_heads


def _pick_q_tile(sq, max_tile=512):
    """Largest divisor of Sq that is <= max_tile and sublane-friendly."""
    if sq <= max_tile:
        return sq
    for t in range(max_tile, 7, -1):
        if sq % t == 0 and t % 8 == 0:
            return t
    return sq


def _vmem_limit_bytes(headroom_bytes=16 * 1024 * 1024):
    capacity = 64 * 1024 * 1024  # conservative fallback (v7x physical VMEM)
    try:
        info = pltpu.get_tpu_info()
        cap = getattr(info, "vmem_capacity_bytes", None)
        if cap:
            capacity = int(cap)
    except Exception:
        pass
    return int(max(32 * 1024 * 1024, capacity - headroom_bytes))


def pack_bert_out_attention_params(wq, bq, wk, bk, wv, bv, num_heads,
                                   head_group=None):
    """Repack projection weights head-group-major (bf16) and fold 1/sqrt(d)
    into the query projection.  Call ONCE at init, not per forward."""
    h_in, all_head = wq.shape
    dctx = wk.shape[0]
    assert all_head % num_heads == 0
    d = all_head // num_heads
    g = _pick_head_group(num_heads, d) if head_group is None else head_group
    assert num_heads % g == 0
    ng = num_heads // g
    gd = g * d
    inv_sqrt_d = 1.0 / math.sqrt(d)

    def pack_w(w, din, scale=1.0):
        # (din, NH*d) -> (NH//G, din, G*d), heads stay in ascending order.
        return (w * scale).reshape(din, ng, gd).transpose(1, 0, 2).astype(jnp.bfloat16)

    def pack_b(b, scale=1.0):
        return (b * scale).reshape(ng, 1, gd).astype(jnp.float32)

    return dict(
        wq=pack_w(wq, h_in, inv_sqrt_d), bq=pack_b(bq, inv_sqrt_d),
        wk=pack_w(wk, dctx),             bk=pack_b(bk),
        wv=pack_w(wv, dctx),             bv=pack_b(bv),
        num_heads=num_heads, head_dim=d, group=g)


# ---------------------------------------------------------------------------
# Wrapper
# ---------------------------------------------------------------------------
def bert_out_attention(hidden_states, context, attention_mask, params, *,
                       return_scores=True, scores_dtype=jnp.float32,
                       q_tile=None):
    num_heads = params['num_heads']
    d = params['head_dim']
    g = params['group']
    ng = num_heads // g
    gd = g * d
    all_head = num_heads * d

    B, Sq, Hq = hidden_states.shape
    _, Sk, Dctx = context.shape

    if attention_mask is None:
        attention_mask = jnp.zeros((B, 1, 1, Sk), dtype=jnp.float32)
    attention_mask = attention_mask.astype(jnp.float32)

    # bf16 activations into the kernel: halves input DMA bytes; all matmuls
    # accumulate in f32 inside the kernel.
    h_bf = hidden_states.astype(jnp.bfloat16)
    c_bf = context.astype(jnp.bfloat16)

    tq = _pick_q_tile(Sq) if q_tile is None else q_tile
    assert Sq % tq == 0

    kernel = functools.partial(_bert_cross_attn_kernel, g=g, d=d)

    out_shapes = [jax.ShapeDtypeStruct((B, Sq, all_head), hidden_states.dtype)]
    out_specs = [pl.BlockSpec((pl.Squeezed(), tq, gd),
                              lambda b, hg, qi: (b, qi, hg))]
    if return_scores:
        out_shapes.append(jax.ShapeDtypeStruct((B, num_heads, Sq, Sk), scores_dtype))
        out_specs.append(pl.BlockSpec((pl.Squeezed(), g, tq, Sk),
                                      lambda b, hg, qi: (b, hg, qi, 0)))

    in_specs = [
        pl.BlockSpec((pl.Squeezed(), tq, Hq),            lambda b, hg, qi: (b, qi, 0)),
        pl.BlockSpec((pl.Squeezed(), Sk, Dctx),          lambda b, hg, qi: (b, 0, 0)),
        pl.BlockSpec((pl.Squeezed(), pl.Squeezed(), 1, Sk),
                     lambda b, hg, qi: (b, 0, 0, 0)),
        pl.BlockSpec((pl.Squeezed(), Hq, gd),            lambda b, hg, qi: (hg, 0, 0)),
        pl.BlockSpec((pl.Squeezed(), 1, gd),             lambda b, hg, qi: (hg, 0, 0)),
        pl.BlockSpec((pl.Squeezed(), Dctx, gd),          lambda b, hg, qi: (hg, 0, 0)),
        pl.BlockSpec((pl.Squeezed(), 1, gd),             lambda b, hg, qi: (hg, 0, 0)),
        pl.BlockSpec((pl.Squeezed(), Dctx, gd),          lambda b, hg, qi: (hg, 0, 0)),
        pl.BlockSpec((pl.Squeezed(), 1, gd),             lambda b, hg, qi: (hg, 0, 0)),
    ]

    outs = pl.pallas_call(
        kernel,
        out_shape=tuple(out_shapes),
        grid_spec=pltpu.PrefetchScalarGridSpec(
            num_scalar_prefetch=0,
            grid=(B, ng, Sq // tq),
            in_specs=in_specs,
            out_specs=out_specs),
        compiler_params=pltpu.CompilerParams(
            dimension_semantics=("parallel", "parallel", "parallel"),
            vmem_limit_bytes=_vmem_limit_bytes()),
    )(h_bf, c_bf, attention_mask,
      params['wq'], params['bq'], params['wk'], params['bk'],
      params['wv'], params['bv'])

    context_layer = outs[0]
    scores = outs[1] if return_scores else None
    return context_layer, scores


# ---------------------------------------------------------------------------
# Pure-JAX reference (matches the PyTorch module)
# ---------------------------------------------------------------------------
def _reference(hidden_states, context, attention_mask,
               wq, bq, wk, bk, wv, bv, num_heads):
    B, Sq, H = hidden_states.shape
    _, Sk, _ = context.shape
    d = H // num_heads
    q = hidden_states @ wq + bq
    k = context @ wk + bk
    v = context @ wv + bv
    qh = q.reshape(B, Sq, num_heads, d).transpose(0, 2, 1, 3)
    kh = k.reshape(B, Sk, num_heads, d).transpose(0, 2, 1, 3)
    vh = v.reshape(B, Sk, num_heads, d).transpose(0, 2, 1, 3)
    scores = jnp.einsum('bhqd,bhkd->bhqk', qh, kh) / math.sqrt(d)
    if attention_mask is not None:
        scores = scores + attention_mask
    probs = jax.nn.softmax(scores, axis=-1)
    ctx = jnp.einsum('bhqk,bhkd->bhqd', probs, vh)
    ctx = ctx.transpose(0, 2, 1, 3).reshape(B, Sq, H)
    return ctx, scores


if __name__ == "__main__":
    # Small config consistent with BertOutAttention: hidden=32, heads=4, ctx_dim=32.
    B, Sq, Sk, H, NH = 2, 8, 8, 32, 4
    CTX_DIM = H

    key = jax.random.PRNGKey(0)
    ks = jax.random.split(key, 10)
    hidden_states = jax.random.normal(ks[0], (B, Sq, H), dtype=jnp.float32)
    context = jax.random.normal(ks[1], (B, Sk, CTX_DIM), dtype=jnp.float32)

    # Additive attention mask (BERT-style): 0 for visible, -10000 for masked.
    visible = (jax.random.uniform(ks[2], (B, 1, 1, Sk)) > 0.2).astype(jnp.float32)
    attention_mask = (1.0 - visible) * -10000.0

    scale = 0.05
    wq = scale * jax.random.normal(ks[3], (H, H), dtype=jnp.float32)
    bq = scale * jax.random.normal(ks[4], (H,), dtype=jnp.float32)
    wk = scale * jax.random.normal(ks[5], (CTX_DIM, H), dtype=jnp.float32)
    bk = scale * jax.random.normal(ks[6], (H,), dtype=jnp.float32)
    wv = scale * jax.random.normal(ks[7], (CTX_DIM, H), dtype=jnp.float32)
    bv = scale * jax.random.normal(ks[8], (H,), dtype=jnp.float32)

    # One-time weight packing (hoisted out of the per-forward path).
    params = pack_bert_out_attention_params(wq, bq, wk, bk, wv, bv, NH)

    ctx_layer, attn_scores = bert_out_attention(
        hidden_states, context, attention_mask, params)
    jax.block_until_ready((ctx_layer, attn_scores))

    ctx_ref, scores_ref = _reference(
        hidden_states, context, attention_mask,
        wq, bq, wk, bk, wv, bv, NH)

    assert ctx_layer.shape == (B, Sq, H)
    assert attn_scores.shape == (B, NH, Sq, Sk)
    # bf16 MXU operands + approx reciprocal -> looser tolerance than pure f32.
    assert jnp.allclose(ctx_layer, ctx_ref, atol=2e-2, rtol=2e-2)
    assert jnp.allclose(attn_scores, scores_ref, atol=2e-2, rtol=2e-2)

    print("KERNEL_OK")
</pallas_src>

<mosaic_0001>
module attributes {stable_mosaic.version = 11 : i64} {
  func.func @_bert_cross_attn_kernel(%arg0: i32, %arg1: i32, %arg2: i32, %arg3: memref<1x8x32xbf16, #tpu.memory_space<vmem>>, %arg4: memref<1x8x32xbf16, #tpu.memory_space<vmem>>, %arg5: memref<1x1x1x8xf32, #tpu.memory_space<vmem>>, %arg6: memref<1x32x32xbf16, #tpu.memory_space<vmem>>, %arg7: memref<1x1x32xf32, #tpu.memory_space<vmem>>, %arg8: memref<1x32x32xbf16, #tpu.memory_space<vmem>>, %arg9: memref<1x1x32xf32, #tpu.memory_space<vmem>>, %arg10: memref<1x32x32xbf16, #tpu.memory_space<vmem>>, %arg11: memref<1x1x32xf32, #tpu.memory_space<vmem>>, %arg12: memref<1x8x32xf32, #tpu.memory_space<vmem>>, %arg13: memref<1x4x8x8xf32, #tpu.memory_space<vmem>>) attributes {dimension_semantics = [#tpu.dimension_semantics<parallel>, #tpu.dimension_semantics<parallel>, #tpu.dimension_semantics<parallel>], iteration_bounds = array<i64: 2, 1, 1>, scalar_prefetch = 0 : i64, scratch_operands = 0 : i64, tpu.core_type = #tpu.core_type<tc>, window_params = [{transform_indices = @transform_0, window_bounds = array<i64: 1, 8, 32>}, {transform_indices = @transform_1, window_bounds = array<i64: 1, 8, 32>}, {transform_indices = @transform_2, window_bounds = array<i64: 1, 1, 1, 8>}, {transform_indices = @transform_3, window_bounds = array<i64: 1, 32, 32>}, {transform_indices = @transform_4, window_bounds = array<i64: 1, 1, 32>}, {transform_indices = @transform_5, window_bounds = array<i64: 1, 32, 32>}, {transform_indices = @transform_6, window_bounds = array<i64: 1, 1, 32>}, {transform_indices = @transform_7, window_bounds = array<i64: 1, 32, 32>}, {transform_indices = @transform_8, window_bounds = array<i64: 1, 1, 32>}, {transform_indices = @transform_9, window_bounds = array<i64: 1, 8, 32>}, {transform_indices = @transform_10, window_bounds = array<i64: 1, 4, 8, 8>}]} {
    %c0 = arith.constant 0 : index
    %c0_0 = arith.constant 0 : index
    %c0_1 = arith.constant 0 : index
    %0 = vector.load %arg3[%c0, %c0_0, %c0_1] : memref<1x8x32xbf16, #tpu.memory_space<vmem>>, vector<1x8x32xbf16>
    %1 = vector.shape_cast %0 : vector<1x8x32xbf16> to vector<8x32xbf16>
    %c0_2 = arith.constant 0 : index
    %c0_3 = arith.constant 0 : index
    %c0_4 = arith.constant 0 : index
    %2 = vector.load %arg4[%c0_2, %c0_3, %c0_4] : memref<1x8x32xbf16, #tpu.memory_space<vmem>>, vector<1x8x32xbf16>
    %3 = vector.shape_cast %2 : vector<1x8x32xbf16> to vector<8x32xbf16>
    %c0_5 = arith.constant 0 : index
    %c0_6 = arith.constant 0 : index
    %c0_7 = arith.constant 0 : index
    %4 = vector.load %arg6[%c0_5, %c0_6, %c0_7] : memref<1x32x32xbf16, #tpu.memory_space<vmem>>, vector<1x32x32xbf16>
    %5 = vector.shape_cast %4 : vector<1x32x32xbf16> to vector<32x32xbf16>
    %cst = arith.constant dense<0.000000e+00> : vector<8x32xf32>
    %6 = tpu.matmul %1, %5, %cst {dimension_numbers = #tpu.dot_dimension_numbers<[1], [0], [0], [1], [0, 0, 1, 1], [], []>} : vector<8x32xbf16>, vector<32x32xbf16>, vector<8x32xf32> -> vector<8x32xf32>
    %c0_8 = arith.constant 0 : index
    %c0_9 = arith.constant 0 : index
    %c0_10 = arith.constant 0 : index
    %7 = vector.load %arg7[%c0_8, %c0_9, %c0_10] : memref<1x1x32xf32, #tpu.memory_space<vmem>>, vector<1x1x32xf32>
    %8 = vector.shape_cast %7 : vector<1x1x32xf32> to vector<1x32xf32>
    %9 = vector.broadcast %8 : vector<1x32xf32> to vector<8x32xf32>
    %10 = arith.addf %6, %9 : vector<8x32xf32>
    %c0_11 = arith.constant 0 : index
    %c0_12 = arith.constant 0 : index
    %c0_13 = arith.constant 0 : index
    %11 = vector.load %arg8[%c0_11, %c0_12, %c0_13] : memref<1x32x32xbf16, #tpu.memory_space<vmem>>, vector<1x32x32xbf16>
    %12 = vector.shape_cast %11 : vector<1x32x32xbf16> to vector<32x32xbf16>
    %cst_14 = arith.constant dense<0.000000e+00> : vector<8x32xf32>
    %13 = tpu.matmul %3, %12, %cst_14 {dimension_numbers = #tpu.dot_dimension_numbers<[1], [0], [0], [1], [0, 0, 1, 1], [], []>} : vector<8x32xbf16>, vector<32x32xbf16>, vector<8x32xf32> -> vector<8x32xf32>
    %c0_15 = arith.constant 0 : index
    %c0_16 = arith.constant 0 : index
    %c0_17 = arith.constant 0 : index
    %14 = vector.load %arg9[%c0_15, %c0_16, %c0_17] : memref<1x1x32xf32, #tpu.memory_space<vmem>>, vector<1x1x32xf32>
    %15 = vector.shape_cast %14 : vector<1x1x32xf32> to vector<1x32xf32>
    %16 = vector.broadcast %15 : vector<1x32xf32> to vector<8x32xf32>
    %17 = arith.addf %13, %16 : vector<8x32xf32>
    %c0_18 = arith.constant 0 : index
    %c0_19 = arith.constant 0 : index
    %c0_20 = arith.constant 0 : index
    %18 = vector.load %arg10[%c0_18, %c0_19, %c0_20] : memref<1x32x32xbf16, #tpu.memory_space<vmem>>, vector<1x32x32xbf16>
    %19 = vector.shape_cast %18 : vector<1x32x32xbf16> to vector<32x32xbf16>
    %cst_21 = arith.constant dense<0.000000e+00> : vector<8x32xf32>
    %20 = tpu.matmul %3, %19, %cst_21 {dimension_numbers = #tpu.dot_dimension_numbers<[1], [0], [0], [1], [0, 0, 1, 1], [], []>} : vector<8x32xbf16>, vector<32x32xbf16>, vector<8x32xf32> -> vector<8x32xf32>
    %c0_22 = arith.constant 0 : index
    %c0_23 = arith.constant 0 : index
    %c0_24 = arith.constant 0 : index
    %21 = vector.load %arg11[%c0_22, %c0_23, %c0_24] : memref<1x1x32xf32, #tpu.memory_space<vmem>>, vector<1x1x32xf32>
    %22 = vector.shape_cast %21 : vector<1x1x32xf32> to vector<1x32xf32>
    %23 = vector.broadcast %22 : vector<1x32xf32> to vector<8x32xf32>
    %24 = arith.addf %20, %23 : vector<8x32xf32>
    %25 = arith.truncf %10 : vector<8x32xf32> to vector<8x32xbf16>
    %26 = vector.shape_cast %25 : vector<8x32xbf16> to vector<8x4x8xbf16>
    %27 = tpu.transpose %26, [1, 0, 2] : vector<8x4x8xbf16> -> vector<4x8x8xbf16>
    %28 = arith.truncf %17 : vector<8x32xf32> to vector<8x32xbf16>
    %29 = vector.shape_cast %28 : vector<8x32xbf16> to vector<8x4x8xbf16>
    %30 = tpu.transpose %29, [1, 0, 2] : vector<8x4x8xbf16> -> vector<4x8x8xbf16>
    %31 = arith.truncf %24 : vector<8x32xf32> to vector<8x32xbf16>
    %32 = vector.shape_cast %31 : vector<8x32xbf16> to vector<8x4x8xbf16>
    %33 = tpu.transpose %32, [1, 0, 2] : vector<8x4x8xbf16> -> vector<4x8x8xbf16>
    "tpu.trace_start"() <{level = 10 : i32, message = "gqd,gkd->gqk"}> : () -> ()
    %cst_25 = arith.constant dense<0.000000e+00> : vector<4x8x8xf32>
    %34 = tpu.matmul %27, %30, %cst_25 {dimension_numbers = #tpu.dot_dimension_numbers<[2], [2], [1], [1], [0, 0, 0, 1, 1, 1], [0], [0]>} : vector<4x8x8xbf16>, vector<4x8x8xbf16>, vector<4x8x8xf32> -> vector<4x8x8xf32>
    "tpu.trace_stop"() : () -> ()
    %c0_26 = arith.constant 0 : index
    %c0_27 = arith.constant 0 : index
    %c0_28 = arith.constant 0 : index
    %c0_29 = arith.constant 0 : index
    %35 = vector.load %arg5[%c0_26, %c0_27, %c0_28, %c0_29] : memref<1x1x1x8xf32, #tpu.memory_space<vmem>>, vector<1x1x1x8xf32>
    %36 = vector.shape_cast %35 : vector<1x1x1x8xf32> to vector<1x8xf32>
    %37 = vector.shape_cast %36 : vector<1x8xf32> to vector<1x1x8xf32>
    %38 = vector.broadcast %37 : vector<1x1x8xf32> to vector<4x8x8xf32>
    %39 = arith.addf %34, %38 : vector<4x8x8xf32>
    %c0_30 = arith.constant 0 : index
    %c0_31 = arith.constant 0 : index
    %c0_32 = arith.constant 0 : index
    %c0_33 = arith.constant 0 : index
    %40 = vector.load %arg13[%c0_30, %c0_31, %c0_32, %c0_33] : memref<1x4x8x8xf32, #tpu.memory_space<vmem>>, vector<1x4x8x8xf32>
    %41 = vector.shape_cast %40 : vector<1x4x8x8xf32> to vector<4x8x8xf32>
    %42 = vector.shape_cast %39 : vector<4x8x8xf32> to vector<1x4x8x8xf32>
    tpu.vector_store %arg13[%c0_30, %c0_31, %c0_32, %c0_33], %42 {strides = array<i32>} : memref<1x4x8x8xf32, #tpu.memory_space<vmem>>, vector<1x4x8x8xf32>,
    %cst_34 = arith.constant dense<0xFF800000> : vector<4x8xf32>
    %43 = vector.multi_reduction <maximumf>, %39, %cst_34 [2] : vector<4x8x8xf32> to vector<4x8xf32>
    %44 = vector.shape_cast %43 : vector<4x8xf32> to vector<4x8x1xf32>
    %45 = vector.broadcast %44 : vector<4x8x1xf32> to vector<4x8x8xf32>
    %46 = arith.subf %39, %45 : vector<4x8x8xf32>
    %47 = math.exp %46 : vector<4x8x8xf32>
    %cst_35 = arith.constant dense<0.000000e+00> : vector<4x8xf32>
    %48 = vector.multi_reduction <add>, %47, %cst_35 [2] : vector<4x8x8xf32> to vector<4x8xf32>
    %49 = vector.shape_cast %48 : vector<4x8xf32> to vector<4x8x1xf32>
    %50 = tpu.reciprocal %49 {approx = true} : vector<4x8x1xf32> -> vector<4x8x1xf32>
    %51 = vector.broadcast %50 : vector<4x8x1xf32> to vector<4x8x8xf32>
    %52 = arith.mulf %47, %51 : vector<4x8x8xf32>
    %53 = arith.truncf %52 : vector<4x8x8xf32> to vector<4x8x8xbf16>
    "tpu.trace_start"() <{level = 10 : i32, message = "gqk,gkd->gqd"}> : () -> ()
    %cst_36 = arith.constant dense<0.000000e+00> : vector<4x8x8xf32>
    %54 = tpu.matmul %53, %33, %cst_36 {dimension_numbers = #tpu.dot_dimension_numbers<[2], [1], [1], [2], [0, 0, 0, 1, 1, 2], [0], [0]>} : vector<4x8x8xbf16>, vector<4x8x8xbf16>, vector<4x8x8xf32> -> vector<4x8x8xf32>
    "tpu.trace_stop"() : () -> ()
    %55 = tpu.transpose %54, [1, 0, 2] : vector<4x8x8xf32> -> vector<8x4x8xf32>
    %56 = vector.shape_cast %55 : vector<8x4x8xf32> to vector<8x32xf32>
    %c0_37 = arith.constant 0 : index
    %c0_38 = arith.constant 0 : index
    %c0_39 = arith.constant 0 : index
    %57 = vector.load %arg12[%c0_37, %c0_38, %c0_39] : memref<1x8x32xf32, #tpu.memory_space<vmem>>, vector<1x8x32xf32>
    %58 = vector.shape_cast %57 : vector<1x8x32xf32> to vector<8x32xf32>
    %59 = vector.shape_cast %56 : vector<8x32xf32> to vector<1x8x32xf32>
    tpu.vector_store %arg12[%c0_37, %c0_38, %c0_39], %59 {strides = array<i32>} : memref<1x8x32xf32, #tpu.memory_space<vmem>>, vector<1x8x32xf32>,
    return
  }
  func.func @transform_0(%arg0: i32, %arg1: i32, %arg2: i32) -> (i32, i32, i32) {
    %c0_i32 = arith.constant 0 : i32
    %c0_i32_0 = arith.constant 0 : i32
    return %arg0, %arg2, %c0_i32 : i32, i32, i32
  }
  func.func @transform_1(%arg0: i32, %arg1: i32, %arg2: i32) -> (i32, i32, i32) {
    %c0_i32 = arith.constant 0 : i32
    %c0_i32_0 = arith.constant 0 : i32
    %c0_i32_1 = arith.constant 0 : i32
    return %arg0, %c0_i32, %c0_i32_0 : i32, i32, i32
  }
  func.func @transform_2(%arg0: i32, %arg1: i32, %arg2: i32) -> (i32, i32, i32, i32) {
    %c0_i32 = arith.constant 0 : i32
    %c0_i32_0 = arith.constant 0 : i32
    %c0_i32_1 = arith.constant 0 : i32
    %c0_i32_2 = arith.constant 0 : i32
    return %arg0, %c0_i32, %c0_i32_0, %c0_i32_1 : i32, i32, i32, i32
  }
  func.func @transform_3(%arg0: i32, %arg1: i32, %arg2: i32) -> (i32, i32, i32) {
    %c0_i32 = arith.constant 0 : i32
    %c0_i32_0 = arith.constant 0 : i32
    %c0_i32_1 = arith.constant 0 : i32
    return %arg1, %c0_i32, %c0_i32_0 : i32, i32, i32
  }
  func.func @transform_4(%arg0: i32, %arg1: i32, %arg2: i32) -> (i32, i32, i32) {
    %c0_i32 = arith.constant 0 : i32
    %c0_i32_0 = arith.constant 0 : i32
    %c0_i32_1 = arith.constant 0 : i32
    return %arg1, %c0_i32, %c0_i32_0 : i32, i32, i32
  }
  func.func @transform_5(%arg0: i32, %arg1: i32, %arg2: i32) -> (i32, i32, i32) {
    %c0_i32 = arith.constant 0 : i32
    %c0_i32_0 = arith.constant 0 : i32
    %c0_i32_1 = arith.constant 0 : i32
    return %arg1, %c0_i32, %c0_i32_0 : i32, i32, i32
  }
  func.func @transform_6(%arg0: i32, %arg1: i32, %arg2: i32) -> (i32, i32, i32) {
    %c0_i32 = arith.constant 0 : i32
    %c0_i32_0 = arith.constant 0 : i32
    %c0_i32_1 = arith.constant 0 : i32
    return %arg1, %c0_i32, %c0_i32_0 : i32, i32, i32
  }
  func.func @transform_7(%arg0: i32, %arg1: i32, %arg2: i32) -> (i32, i32, i32) {
    %c0_i32 = arith.constant 0 : i32
    %c0_i32_0 = arith.constant 0 : i32
    %c0_i32_1 = arith.constant 0 : i32
    return %arg1, %c0_i32, %c0_i32_0 : i32, i32, i32
  }
  func.func @transform_8(%arg0: i32, %arg1: i32, %arg2: i32) -> (i32, i32, i32) {
    %c0_i32 = arith.constant 0 : i32
    %c0_i32_0 = arith.constant 0 : i32
    %c0_i32_1 = arith.constant 0 : i32
    return %arg1, %c0_i32, %c0_i32_0 : i32, i32, i32
  }
  func.func @transform_9(%arg0: i32, %arg1: i32, %arg2: i32) -> (i32, i32, i32) {
    %c0_i32 = arith.constant 0 : i32
    return %arg0, %arg2, %arg1 : i32, i32, i32
  }
  func.func @transform_10(%arg0: i32, %arg1: i32, %arg2: i32) -> (i32, i32, i32, i32) {
    %c0_i32 = arith.constant 0 : i32
    %c0_i32_0 = arith.constant 0 : i32
    return %arg0, %arg1, %arg2, %c0_i32 : i32, i32, i32, i32
  }
}

</mosaic_0001>

<bundles_post_ra>
// kernel: tpu_custom_call.1
= control target key start
LH: loop header
LB: loop body
LE: loop exit
PB: predicated region body
PF: predicated region fallthrough
CT: control target
= control target key end

     0   :  { %s2717_s0 = inlined_call_operand.hbm [shape: bf16[2,8,32], index: 0, kind: input, shape index: {}]   ;;  %s2718_s1 = inlined_call_operand.hbm [shape: bf16[2,8,32], index: 1, kind: input, shape index: {}]   ;;  %s2719_s2 = inlined_call_operand.hbm [shape: f32[2,1,1,8], index: 2, kind: input, shape index: {}]   ;;  %s2720_s3 = inlined_call_operand.hbm [shape: bf16[1,32,32], index: 3, kind: input, shape index: {}]   ;;  %s2721_s4 = inlined_call_operand.vmem [shape: f32[1,1,32], index: 4, kind: input, shape index: {}]   ;;  %s2722_s5 = inlined_call_operand.hbm [shape: bf16[1,32,32], index: 5, kind: input, shape index: {}]   ;;  %s2723_s6 = inlined_call_operand.vmem [shape: f32[1,1,32], index: 6, kind: input, shape index: {}]   ;;  %s2724_s7 = inlined_call_operand.hbm [shape: bf16[1,32,32], index: 7, kind: input, shape index: {}]   ;;  %s2725_s8 = inlined_call_operand.vmem [shape: f32[1,1,32], index: 8, kind: input, shape index: {}]   ;;  %s2726_s9 = inlined_call_operand.hbm [shape: f32[2,8,32], index: 9, kind: output, shape index: {0}]   ;;  %s2727_s10 = inlined_call_operand.hbm [shape: f32[2,4,8,8], index: 10, kind: output, shape index: {1}]  }
   0x1   :  { %2743 = sst [smem:[#allocation30_spill]] %s2718_s1 }
   0x2   :  { %2744 = sst [smem:[#allocation31_spill]] %s2720_s3 }
   0x3   :  { %2745 = sst [smem:[#allocation32_spill]] %s2722_s5 }
   0x4   :  { %2746 = sst [smem:[#allocation33_spill]] %s2724_s7 }
   0x5   :  { %2747 = sst [smem:[#allocation34_spill]] %s2725_s8 }
   0x6   :  { %2748 = sst [smem:[#allocation35_spill]] %s2726_s9 }
   0x7   :  { %2749 = sst [smem:[#allocation36_spill]] %s2727_s10 }
   0x8   :  { %16 = vsyncpa [#allocation3], 0 }
   0x9   :  { %18 = vsyncpa [#allocation3 + $0x1], 0 }
   0xa   :  { %19 = vsyncpa [#allocation6], 0 }
   0xb   :  { %21 = vsyncpa [#allocation6 + $0x1], 0 }
   0xc   :  { %22 = vsyncpa [#allocation9], 0 }
   0xd   :  { %23 = vsyncpa [#allocation12], 0 }
   0xe   :  { %24 = vsyncpa [#allocation4], 0 }
   0xf   :  { %26 = vsyncpa [#allocation4 + $0x1], 0 }
  0x10   :  { %27 = vsyncpa [#allocation15], 0 }
  0x11   :  { %29 = vsyncpa [#allocation15 + $0x1], 0  ;;  %s2282_s13 = smov 0   ;;  %s2284_s14 = smov 0  }
  0x12   :  { %s2286_s15 = smov 0   ;;  %s2288_s16 = smov 0  }
  0x13   :  { %s2290_s17 = smov 0   ;;  %s2292_s18 = smov 0  }
  0x14 LB: > { %2750 = sst [smem:[#allocation22_spill]] %s2191_s13  ;;  %s2313_s19 = sadd.s32 4294967295, %s2211_s18   ;;  %s2211_s18 = sphi %s2292_s18, %s35_s18   ;;  %s2207_s17 = sphi %s2290_s17, %s2786_s17   ;;  %s2203_s16 = sphi %s2288_s16, %s2785_s16   ;;  %s2199_s15 = sphi %s2286_s15, %s2781_s15   ;;  %s2195_s14 = sphi %s2284_s14, %s2784_s14   ;;  %s2191_s13 = sphi %s2282_s13, %s2783_s13  }
  0x15   : > { %2751 = sst [smem:[#allocation23_spill]] %s2199_s15  ;;  %p1697_p0 = scmp.ge.s32.totalorder %s2211_s18, 1 }
  0x16   : > { %2752 = sst [smem:[#allocation24_spill]] %s2203_s16  ;;  %p77_p1 = scmp.eq.s32.totalorder %s2313_s19, 0 }
  0x17   : > { %2753 = sst [smem:[#allocation25_spill]] %s2211_s18  ;;  %p355_p2 = scmp.lt.s32.totalorder %s2211_s18, 3 }
  0x18   : > { %s2754_s3 = sld [smem:[#allocation31_spill]]  ;;  %s2213_s24 = smov [#allocation8]  }
  0x19   : > { %p2321_p3 = pnand %p1697_p0, %p355_p2  ;;  %s371_s25 = sshll.u32 %s2213_s24, 4  ;;  %s372_s25 = int_to_ptr.vmem [resolvable:$true] %s371_s25 }
  0x1a   : > { %s2728_s27 = smov 64   ;;  %s2730_s28 = smov 4  }
  0x1b   : > { %p1788_p4 = pneg %p2321_p3  ;;  %s1696_s29 = sadd.s32 4294967294, %s2211_s18  }
  0x1c   : > { %s54_s30 = sadd.s32 1, %s2207_s17  ;;  %s63_s11 = sadd.s32 1, %s2199_s15 }
  0x1d   : > { %p2329_p5 = pnand %p1788_p4, %p77_p1  ;;  %p56_p7 = scmp.ge.s32.totalorder %s54_s30, 2 }
  0x1e   : > { %s369_s22 = sshll.u32 %s2754_s3, 4  ;;  %p70_p8 = scmp.ne.s32.totalorder %s2199_s15, %s2195_s14  ;;  %s370_s22 = int_to_ptr.hbm [resolvable:$true] %s369_s22 }
  0x1f   : > { %1791 = dma.hbm_to_vmem [thread:$0]  (!%p2329_p5), %s370_s22, 256, %s372_s25, [#allocation9], %s2728_s27, %s2728_s27, %s2730_s28  }
  0x20   : > { %p71_p9 = scmp.eq.s32.totalorder %s2211_s18, 0  ;;  %p76_p10 = scmp.ne.s32.totalorder %s2195_s14, %s2191_s13 }
  0x21   : > { %s2788_s30 = smov (%p56_p7, %s54_s30), 0  ;;  %p312_p13 = scmp.eq.s32.totalorder %s2313_s19, 1 }
  0x22   : > { %2757 = sst [smem:[#allocation26_spill]] %s2788_s30  ;;  %p2349_p11 = por %p71_p9, %p70_p8 }
  0x23   : > { %p2355_p12 = por %p77_p1, %p76_p10  ;;  %s58_s21 = ssub.s32 %s2207_s17, %s2788_s30 }
  0x24   : > { %p61_p0 = scmp.eq.s32.totalorder %s58_s21, 0  ;;  %p318_p2 = scmp.eq.s32.totalorder %s1696_s29, 1 }
  0x25   : > { %p2362_p4 = por %p312_p13, %p70_p8  ;;  %p1818_p7 = scmp.lt.s32.totalorder %s2211_s18, 2 }
  0x26   : > { %s2368_s24 = scalar_select %p61_p0, %s2199_s15, %s63_s11  }
  0x27   : > { %s2760_s22 = scalar_select %p2362_p4, 1, 0 }
  0x28   : > { %2762 = sst [smem:[#allocation28_spill]] %s2368_s24  ;;  %p2370_p9 = por %p318_p2, %p76_p10 }
  0x29   : > { %2761 = sst [smem:[#allocation27_spill]] %s2760_s22  ;;  %s2375_s27 = sand.u32 1, %s2199_s15  }
  0x2a   : > { %s2763_s25 = scalar_select %p2370_p9, 1, 0 }
  0x2b   : > { %s1705_s28 = sshll.u32 %s2375_s27, 2  ;;  %s1706_s3 = sshll.u32 %s2207_s17, 2 }
  0x2c   : > { %2764 = sst [smem:[#allocation29_spill]] %s2763_s25  ;;  %p2381_p6 = pnand %p1818_p7, %p2349_p11 }
  0x2d   : > { %s457_s29 = sand.u32 1, %s2211_s18   ;;  %s2766_s1 = sld [smem:[#allocation30_spill]] }
  0x2e   : > { %s461_s9 = scalar_lea.vmem [#allocation5], %s1705_s28  ;;  %s2389_s15 = scalar_lea.sflag [#allocation6], %s457_s29 }
  0x2f   : > { %s469_s25 = sshll.u32 %s461_s9, 4  ;;  %s2767_s5 = sld [smem:[#allocation32_spill]]  ;;  %s470_s25 = int_to_ptr.vmem [resolvable:$true] %s469_s25 }
  0x30   : > { %s2216_s18 = smov [#allocation10]   ;;  %s2768_s7 = sld [smem:[#allocation33_spill]] }
  0x31   : > { %s394_s30 = sshll.u32 %s2216_s18, 4  ;;  %s2769_s29 = smov 4   ;;  %s395_s30 = int_to_ptr.vmem [resolvable:$true] %s394_s30 }
  0x32   : > { %s446_s12 = scalar_lea.hbm %s2717_s0, %s1706_s3 }
  0x33   : > { %s465_s24 = scalar_lea.hbm %s2766_s1, %s1706_s3  ;;  %s2770_s1 = smov 64  }
  0x34   : > { %s467_s13 = sshll.u32 %s465_s24, 4  ;;  %s441_s24 = scalar_lea.vmem [#allocation2], %s1705_s28  ;;  %s468_s13 = int_to_ptr.hbm [resolvable:$true] %s467_s13 }
  0x35   : > { %1804 = dma.hbm_to_vmem [thread:$0]  (!%p2381_p6), %s468_s13, 64, %s470_s25, %s2389_s15  }
  0x36   : > { %s392_s10 = sshll.u32 %s2767_s5, 4  ;;  %s415_s11 = sshll.u32 %s2768_s7, 4  ;;  %s393_s10 = int_to_ptr.hbm [resolvable:$true] %s392_s10  ;;  %s416_s11 = int_to_ptr.hbm [resolvable:$true] %s415_s11 }
  0x37   : > { %1794 = dma.hbm_to_vmem [thread:$0]  (!%p2329_p5), %s393_s10, 256, %s395_s30, [#allocation9], %s2770_s1, %s2770_s1, %s2769_s29  }
  0x38   : > { %s2217_s13 = smov [#allocation11]   ;;  %s450_s9 = sshll.u32 %s441_s24, 4  ;;  %s451_s9 = int_to_ptr.vmem [resolvable:$true] %s450_s9 }
  0x39   : > { %s417_s22 = sshll.u32 %s2217_s13, 4  ;;  %s448_s5 = sshll.u32 %s446_s12, 4  ;;  %s418_s22 = int_to_ptr.vmem [resolvable:$true] %s417_s22  ;;  %s449_s5 = int_to_ptr.hbm [resolvable:$true] %s448_s5 }
  0x3a   : > { %1797 = dma.hbm_to_vmem [thread:$0]  (!%p2329_p5), %s416_s11, 256, %s418_s22, [#allocation12], %s2770_s1, %s2770_s1, %s2769_s29  }
  0x3b   : > { %s438_s10 = scalar_lea.sflag [#allocation3], %s2375_s27  ;;  %s482_s13 = scalar_lea.hbm %s2719_s2, %s2207_s17 }
  0x3c   : > { %1801 = dma.hbm_to_vmem [thread:$0]  (!%p2381_p6), %s449_s5, 64, %s451_s9, %s438_s10  }
  0x3d   : > { %s479_s7 = scalar_lea.vmem [#allocation7], %s2375_s27  ;;  %s484_s8 = sshll.u32 %s482_s13, 4  ;;  %s485_s8 = int_to_ptr.hbm [resolvable:$true] %s484_s8 }
  0x3e   : > { %s486_s16 = sshll.u32 %s479_s7, 4  ;;  %495 = sbr.rel (%p2321_p3) target bundleno = 1043 (0x413), region = 56  ;;  %s487_s16 = int_to_ptr.vmem [resolvable:$true] %s486_s16 }
  0x3f   : > { %1807 = dma.hbm_to_vmem [thread:$0]  (!%p2381_p6), %s485_s8, 16, %s487_s16, %s2389_s15  }
  0x40   : > { %s2427_s1 = sand.u32 (!%p2321_p3), 1, %s2195_s14  }
  0x41   : > { %s1710_s3 = sshll.u32 (!%p2321_p3), %s2427_s1, 2  ;;  %s498_s5 = scalar_lea.sflag (!%p2321_p3), [#allocation3], %s2427_s1 }
  0x42   : > { %s501_s28 = scalar_lea.vmem (!%p2321_p3), [#allocation2], %s1710_s3 }
  0x43   : > { %2166 = dma.done.wait (%p2355_p12), %s498_s5, 64  }
  0x44   : > { %2168 = vsyncadd (%p2355_p12), %s498_s5, 4294967232  ;;  %s507_s7 = sand.u32 1, %s2313_s19   ;;  %s511_s15 = scalar_lea.vmem [#allocation5], %s1710_s3 }
  0x45   : > { %s508_s8 = scalar_lea.sflag [#allocation6], %s507_s7 }
  0x46   : > { %2170 = dma.done.wait (%p2355_p12), %s508_s8, 80  }
  0x47   : > { %2172 = vsyncadd (%p2355_p12), %s508_s8, 4294967216  ;;  %s520_s16 = scalar_lea.vmem [#allocation7], %s2427_s1 }
  0x48   : > { %2174 = dma.done.wait (%p77_p1), [#allocation9], 512  }
  0x49   : > { %2176 = vsyncadd (%p77_p1), [#allocation9], 4294966784 }
  0x4a   : > { %2178 = dma.done.wait (%p77_p1), [#allocation12], 256  }
  0x4b   : > { %2180 = vsyncadd (%p77_p1), [#allocation12], 4294967040  ;;  %v1762_v0 = vld [vmem:[#allocation10 + $0x8] sm:$0xff]  ;;  %v1760_v1 = vld [vmem:[#allocation8 + $0x8] sm:$0xff]  ;;  %vm629_vm0 = vcmask 261120   ;;  %s2218_s21 = smov 104  }
  0x4c   : > { %675 = vmatpush.bf16.msra.mxu1 %v1762_v0  ;;  %v1761_v2 = vld [vmem:[#allocation10] sm:$0xff]  ;;  %639 = vmatpush.bf16.msra.mxu0 %v1760_v1  ;;  %v1759_v3 = vld [vmem:[#allocation8] sm:$0xff]  ;;  %v1885_v6 = vld [vmem:[%s2723_s6] ss:$0 sm:$0xff]  ;;  %s2219_s11 = smov 120   ;;  %s2220_s29 = smov 112  }
  0x4d   : > { %v608_v4 = vld [vmem:[%s511_s15] sm:$0xf]  ;;  %v607_v5 = vld [vmem:[%s501_s28] sm:$0xf]  ;;  %v1763_v18 = vld [vmem:[#allocation11] sm:$0xff]  ;;  %vm746_vm1 = vcmask 1047556  }
  0x4e   : > { %v1886_v7 = vld [vmem:[%s2721_s4] ss:$0 sm:$0xff]  ;;  %v2221_v19 = vmov 1983009808   ;;  %v2222_v35 = vmov 1934713408  }
  0x4f   : > { %v1764_v16 = vld [vmem:[#allocation11 + $0x8] sm:$0xff]  ;;  %v737_v20 = vunpack.c.l.s4 %v2221_v19  ;;  %v751_v36 = vunpack.c.l.s4 %v2222_v35  ;;  %vm1086_vm2 = vcmask 64512   ;;  %s1716_s22 = sshll.u32 %s2427_s1, 5  ;;  %s2771_s24 = sld [smem:[#allocation34_spill]]  ;;  %vm1218_vm3 = vcmask 1043456  }
  0x50   : > { %676 = vmatpush.bf16.msra.mxu1 %v1761_v2  ;;  %640 = vmatpush.bf16.msra.mxu0 %v1759_v3  ;;  %s2539_s18 = scalar_lea.vmem [#allocation14], %s1716_s22  ;;  %s2772_s9 = sld [smem:[#allocation24_spill]] }
  0x51   : > { %708 = vmatpush.bf16.msra.mxu2 %v1764_v16  ;;  %v2464_v24 = vunpack.c.0.s8 %v737_v20  ;;  %v2470_v49 = vunpack.c.0.s8 %v751_v36  ;;  %s1458_s10 = sshll.u32 %s2539_s18, 4  ;;  %s2773_s3 = sld [smem:[#allocation36_spill]]  ;;  %s2650_s10 = int_to_ptr.vmem [resolvable:$true] %s1458_s10 }
  0x52   : > { %s2223_s7 = smov 16   ;;  %s2224_s15 = smov 24  }
  0x53   : > { %1734 = vmatmul.msk.bf16.vlgmr.msra.gmra.mxu1 %vm629_vm0, %v608_v4  ;;  %1725 = vmatmul.msk.bf16.vlgmr.msra.gmra.mxu0 %vm629_vm0, %v607_v5 }
  0x55   : > { %709 = vmatpush.bf16.msra.mxu2 %v1763_v18 }
  0x56   : > { %s1765_s30 = sshll.u32 %s2772_s9, 5 }
  0x57   : > { %s1457_s5 = scalar_lea.hbm %s2773_s3, %s1765_s30 }
  0x58   : > { %1743 = vmatmul.msk.bf16.vlgmr.msra.gmra.mxu2 %vm629_vm0, %v608_v4  ;;  %s1460_s8 = sshll.u32 %s1457_s5, 4  ;;  %s1461_s8 = int_to_ptr.hbm [resolvable:$true] %s1460_s8 }
  0x59   : > { %s2099_s23 = sshra.s32 %s1461_s8, 4  ;;  %s2100_s23 = int_to_ptr.hbm [resolvable:$true] %s2099_s23 }
  0x5a   : > { %s2101_s27 = scalar_lea.hbm %s2100_s23, 32  ;;  %p2106_p6 = scmp.lt.s32.totalorder %s2100_s23, %s2773_s3 }
  0x5b   : > { %p2102_p1 = scmp.ne.s32.totalorder %s2100_s23, %s2101_s27 }
  0x5d   : > { %p2103_p3 = pnand %p2102_p1, %p2362_p4 }
  0x5f   : > { %p2104_p5 = pneg %p2103_p3 }
  0xd0   : > { %v678_v8 = vpop.f32.mrf.mxu1  ;;  %v642_v10 = vpop.f32.mrf.mxu0 }
  0xd1   : > { %v679_v9 = vadd.f32 %v1885_v6, %v678_v8  ;;  %v643_v11 = vadd.f32 %v1886_v7, %v642_v10 }
  0xd3   : > { %v838_v12 = vpack.c.bf16 %v679_v9, %v679_v9  ;;  %v715_v13 = vpack.c.bf16 %v643_v11, %v643_v11 }
  0xd5   : > { %844 = vrot.lane.b32.xlu1 %v838_v12, %s2218_s21  ;;  %840 = vrot.lane.b32.xlu0 %v838_v12, %s2219_s11  ;;  %v849_v25 = vshrl.u32 %v838_v12, 16  ;;  %v726_v41 = vshrl.u32 %v715_v13, 16 }
  0xd6   : > { %719 = vrot.lane.b32.xlu2 %v715_v13, %s2220_s29 }
  0xd8   : > { %v680_v14 = vpop.f32.mrf.mxu1  ;;  %v644_v15 = vpop.f32.mrf.mxu0 }
  0xdd   : > { %842 = vrot.lane.b32.xlu0 %v838_v12, %s2220_s29  ;;  %717 = vrot.lane.b32.xlu1 %v715_v13, %s2219_s11 }
  0xde   : > { %721 = vrot.lane.b32.xlu2 %v715_v13, %s2218_s21 }
 0x130   : > { %v720_v17 = vpop.permute.xlu2 %719 }
 0x131   : > { %v732_v27 = vshrl.u32 %v720_v17, 16 }
 0x138   : > { %v722_v21 = vpop.permute.xlu2 %721 }
 0x139   : > { %v731_v28 = vpack.i.b16 %v722_v21, %v720_v17  ;;  %v733_v29 = vshrl.u32 %v722_v21, 16 }
 0x13b   : > { %v734_v32 = vpack.i.b16 %v733_v29, %v732_v27  ;;  %v744_v33 = vperm.slane %v731_v28, %v2464_v24 }
 0x13d   : > { %v745_v46 = vrot.slane %v744_v33, 4  ;;  %v771_v47 = vperm.slane %v734_v32, %v2464_v24 }
 0x13f   : > { %v772_v59 = vrot.slane %v771_v47, 4 }
 0x147   : > { %v845_v22 = vpop.permute.xlu1 %844  ;;  %v841_v23 = vpop.permute.xlu0 %840 }
 0x148   : > { %v850_v26 = vshrl.u32 %v841_v23, 16  ;;  %v848_v30 = vpack.i.b16 %v841_v23, %v838_v12  ;;  %v856_v37 = vshrl.u32 %v845_v22, 16 }
 0x14a   : > { %v851_v31 = vpack.i.b16 %v850_v26, %v849_v25  ;;  %v862_v34 = vperm.slane %v848_v30, %v2464_v24 }
 0x14c   : > { %v888_v38 = vperm.slane %v851_v31, %v2464_v24  ;;  %v870_v48 = vrot.slane %v862_v34, 4 }
 0x14e   : > { %v896_v54 = vrot.slane %v888_v38, 4 }
 0x14f   : > { %v843_v39 = vpop.permute.xlu0 %842  ;;  %v718_v40 = vpop.permute.xlu1 %717 }
 0x150   : > { %v854_v42 = vpack.i.b16 %v845_v22, %v843_v39  ;;  %v855_v43 = vshrl.u32 %v843_v39, 16  ;;  %v725_v44 = vpack.i.b16 %v718_v40, %v715_v13  ;;  %v727_v45 = vshrl.u32 %v718_v40, 16 }
 0x152   : > { %v857_v50 = vpack.i.b16 %v856_v37, %v855_v43  ;;  %v867_v51 = vperm.slane %v854_v42, %v2464_v24  ;;  %v728_v52 = vpack.i.b16 %v727_v45, %v726_v41  ;;  %v739_v53 = vperm.slane %v725_v44, %v2464_v24 }
 0x154   : > { %v868_v55 = vrot.slane %v867_v51, 4  ;;  %v871_v56 = vsel %vm746_vm1, %v867_v51, %v870_v48  ;;  %v893_v57 = vperm.slane %v857_v50, %v2464_v24  ;;  %v747_v58 = vsel %vm746_vm1, %v745_v46, %v739_v53 }
 0x155   : > { %v879_v60 = vperm.slane %v871_v56, %v2470_v49  ;;  %v748_v61 = vrot.slane %v739_v53, 4  ;;  %v766_v62 = vperm.slane %v728_v52, %v2464_v24  ;;  %v753_v2 = vperm.slane %v747_v58, %v2470_v49 }
 0x156   : > { %v869_v63 = vsel %vm746_vm1, %v868_v55, %v862_v34  ;;  %v894_v0 = vrot.slane %v893_v57, 4  ;;  %v897_v1 = vsel %vm746_vm1, %v893_v57, %v896_v54 }
 0x157   : > { %v875_v3 = vperm.slane %v869_v63, %v2470_v49  ;;  %v882_v4 = vrot.slane %v879_v60, 4  ;;  %v905_v5 = vperm.slane %v897_v1, %v2470_v49  ;;  %v749_v6 = vsel %vm746_vm1, %v744_v33, %v748_v61 }
 0x158   : > { %v895_v7 = vsel %vm746_vm1, %v894_v0, %v888_v38  ;;  %v757_v8 = vperm.slane %v749_v6, %v2470_v49  ;;  %v773_v9 = vsel %vm746_vm1, %v772_v59, %v766_v62  ;;  %v758_v15 = vrot.slane %v753_v2, 4 }
 0x159   : > { %v880_v10 = vrot.slane %v875_v3, 4  ;;  %v883_v11 = vsel %vm746_vm1, 0, %v882_v4  ;;  %v901_v12 = vperm.slane %v895_v7, %v2470_v49  ;;  %v908_v13 = vrot.slane %v905_v5, 4 }
 0x15a   : > { %v915_v14 = vrot.slane %v883_v11, 4  ;;  %v760_v16 = vrot.slane %v757_v8, 4  ;;  %v774_v17 = vrot.slane %v766_v62, 4  ;;  %v779_v21 = vperm.slane %v773_v9, %v2470_v49 }
 0x15b   : > { %v881_v18 = vsel %vm746_vm1, 0, %v880_v10  ;;  %v906_v19 = vrot.slane %v901_v12, 4  ;;  %v909_v20 = vsel %vm746_vm1, 0, %v908_v13  ;;  %v759_v29 = vsel %vm746_vm1, 0, %v758_v15 }
 0x15c   : > { %v934_v22 = vrot.slane %v909_v20, 4  ;;  %v761_v23 = vsel %vm746_vm1, 0, %v760_v16  ;;  %v775_v25 = vsel %vm746_vm1, %v771_v47, %v774_v17  ;;  %v910_v30 = vsel %vm746_vm1, %v882_v4, %v875_v3 }
 0x15d   : > { %v783_v26 = vperm.slane %v775_v25, %v2470_v49  ;;  %v793_v27 = vrot.slane %v761_v23, 4  ;;  %v907_v28 = vsel %vm746_vm1, 0, %v906_v19  ;;  %v916_v31 = vsel %vm746_vm1, %v915_v14, %v881_v18 }
 0x15e   : > { %v935_v32 = vsel %vm746_vm1, %v934_v22, %v907_v28  ;;  %v784_v33 = vrot.slane %v779_v21, 4  ;;  %v920_v35 = vperm.slane %v916_v31, %v2464_v24  ;;  %v929_v36 = vsel %vm746_vm1, %v908_v13, %v901_v12  ;;  %v1888_v31 = vld [vmem:[%s520_s16] ss:$0 sm:$0xff]  ;;  %s1427_s16 = scalar_lea.sflag [#allocation15], %s2427_s1 }
 0x15f   : > { %v786_v34 = vrot.slane %v783_v26, 4  ;;  %v788_v37 = vsel %vm746_vm1, %v760_v16, %v753_v2  ;;  %v939_v38 = vperm.slane %v935_v32, %v2464_v24  ;;  %v794_v39 = vsel %vm746_vm1, %v793_v27, %v759_v29  ;;  %v711_v29 = vpop.f32.mrf.mxu2 }
 0x160   : > { %v914_v41 = vperm.slane %v910_v30, %v2464_v24  ;;  %v921_v42 = vrot.slane %v920_v35, 4  ;;  %v798_v43 = vperm.slane %v794_v39, %v2464_v24  ;;  %v933_v45 = vperm.slane %v929_v36, %v2464_v24 }
 0x161   : > { %v787_v40 = vsel %vm746_vm1, 0, %v786_v34  ;;  %v940_v46 = vrot.slane %v939_v38, 4  ;;  %v785_v47 = vsel %vm746_vm1, 0, %v784_v33  ;;  %v792_v50 = vperm.slane %v788_v37, %v2464_v24 }
 0x162   : > { %v812_v44 = vrot.slane %v787_v40, 4  ;;  %v922_v48 = vsel %vm746_vm1, %v921_v42, %v914_v41  ;;  %v799_v51 = vrot.slane %v798_v43, 4  ;;  %v807_v57 = vsel %vm746_vm1, %v786_v34, %v779_v21 }
 0x163   : > { %v926_v52 = vperm.slane %v922_v48, %v2470_v49  ;;  %v941_v53 = vsel %vm746_vm1, %v940_v46, %v933_v45  ;;  %v811_v3 = vperm.slane %v807_v57, %v2464_v24  ;;  %v1887_v48 = vld [vmem:[%s2771_s24] ss:$0 sm:$0xff] }
 0x164   : > { %v813_v54 = vsel %vm746_vm1, %v812_v44, %v785_v47  ;;  %v945_v55 = vperm.slane %v941_v53, %v2470_v49  ;;  %v800_v56 = vsel %vm746_vm1, %v799_v51, %v792_v50  ;;  %v712_v50 = vadd.f32 %v1887_v48, %v711_v29 }
 0x165   : > { %v817_v58 = vperm.slane %v813_v54, %v2464_v24  ;;  %v951_v59 = vshrl.u32 %v926_v52, 16  ;;  %v927_v60 = vrot.slane %v926_v52, 4  ;;  %v804_v61 = vperm.slane %v800_v56, %v2470_v49 }
 0x166   : > { %v950_v62 = vpack.i.b16 %v945_v55, %v926_v52  ;;  %v952_v63 = vshrl.u32 %v945_v55, 16  ;;  %v946_v0 = vrot.slane %v945_v55, 4  ;;  %v960_v51 = vpack.c.bf16 %v712_v50, %v712_v50 }
 0x167   : > { %v818_v1 = vrot.slane %v817_v58, 4  ;;  %v928_v2 = vsel %vm746_vm1, 0, %v927_v60  ;;  %v805_v13 = vrot.slane %v804_v61, 4  ;;  %v829_v20 = vshrl.u32 %v804_v61, 16  ;;  %v713_v30 = vpop.f32.mrf.mxu2 }
 0x168   : > { %v1091_v4 = vsel %vm1086_vm2, %v950_v62, 0  ;;  %v953_v5 = vpack.i.b16 %v952_v63, %v951_v59  ;;  %v947_v6 = vsel %vm746_vm1, 0, %v946_v0  ;;  %v957_v8 = vshrl.u32 %v928_v2, 16 }
 0x169   : > { %1100 = vmatpush.bf16.xpose.msra.mxu3 %v1091_v4  ;;  %v956_v7 = vpack.i.b16 %v947_v6, %v928_v2  ;;  %v958_v9 = vshrl.u32 %v947_v6, 16  ;;  %v819_v10 = vsel %vm746_vm1, %v818_v1, %v811_v3  ;;  %v806_v21 = vsel %vm746_vm1, 0, %v805_v13 }
 0x16a   : > { %v1110_v11 = vsel %vm1086_vm2, %v953_v5, 0  ;;  %v823_v12 = vperm.slane %v819_v10, %v2470_v49  ;;  %v835_v27 = vshrl.u32 %v806_v21, 16  ;;  %v971_v10 = vshrl.u32 %v960_v51, 16 }
 0x16b   : > { %1119 = vmatpush.bf16.xpose.msrb.mxu0 %v1110_v11  ;;  %v1129_v14 = vsel %vm1086_vm2, %v956_v7, 0  ;;  %v959_v15 = vpack.i.b16 %v958_v9, %v957_v8 }
 0x16c   : > { %1138 = vmatpush.bf16.xpose.msrb.mxu1 %v1129_v14  ;;  %v830_v16 = vshrl.u32 %v823_v12, 16  ;;  %v824_v17 = vrot.slane %v823_v12, 4  ;;  %v828_v19 = vpack.i.b16 %v823_v12, %v804_v61 }
 0x16d   : > { %v1148_v18 = vsel %vm1086_vm2, %v959_v15, 0 }
 0x16e   : > { %1157 = vmatpush.bf16.xpose.msrb.mxu2 %v1148_v18  ;;  %v825_v22 = vsel %vm746_vm1, 0, %v824_v17  ;;  %v831_v25 = vpack.i.b16 %v830_v16, %v829_v20 }
 0x16f   : > { %v836_v23 = vshrl.u32 %v825_v22, 16  ;;  %v834_v26 = vpack.i.b16 %v825_v22, %v806_v21 }
 0x170   : > { %1744 = vmatmul.msk.bf16.vlgmr.msra.gmra.mxu3 %vm1086_vm2, %v828_v19 }
 0x171   : > { %v837_v28 = vpack.i.b16 %v836_v23, %v835_v27 }
 0x172   : > { %1745 = vmatmul.msk.bf16.vlgmr.msrb.gmra.mxu0 %vm1086_vm2, %v831_v25 }
 0x173   : > { %1746 = vmatmul.msk.bf16.vlgmr.msrb.gmra.mxu1 %vm1086_vm2, %v834_v26 }
 0x175   : > { %1747 = vmatmul.msk.bf16.vlgmr.msrb.gmra.mxu2 %vm1086_vm2, %v837_v28 }
 0x1ef   : > { %v1121_v32 = vpop.f32.mrf.mxu0 }
 0x1f0   : > { %v1122_v33 = vadd.f32 %v1888_v31, %v1121_v32  ;;  %v1140_v34 = vpop.f32.mrf.mxu1 }
 0x1f1   : > { %v1141_v35 = vadd.f32 %v1888_v31, %v1140_v34 }
 0x1f2   : > { %1164 = vst.msk [vmem:[%s2539_s18 + $0x8] sm:$0xff] %vm1086_vm2, %v1122_v33  ;;  %v1170_v36 = vsel %vm1086_vm2, %v1122_v33, -inf }
 0x1f3   : > { %1165 = vst.msk [vmem:[%s2539_s18 + $0x10] sm:$0xff] %vm1086_vm2, %v1141_v35  ;;  %1171 = vmax.xlane.f32.xlu2 %v1170_v36  ;;  %v1102_v37 = vpop.f32.mrf.mxu3  ;;  %v1173_v44 = vsel %vm1086_vm2, %v1141_v35, -inf }
 0x1f4   : > { %v1103_v38 = vadd.f32 %v1888_v31, %v1102_v37 }
 0x1f6   : > { %1163 = vst.msk [vmem:[%s2539_s18] sm:$0xff] %vm1086_vm2, %v1103_v38  ;;  %v1167_v39 = vsel %vm1086_vm2, %v1103_v38, -inf }
 0x1f7   : > { %v1123_v40 = vpop.f32.mrf.mxu0  ;;  %1168 = vmax.xlane.f32.xlu0 %v1167_v39 }
 0x1f8   : > { %v1142_v41 = vpop.f32.mrf.mxu1  ;;  %v1159_v42 = vpop.f32.mrf.mxu2 }
 0x1f9   : > { %v1160_v43 = vadd.f32 %v1888_v31, %v1159_v42 }
 0x1fb   : > { %1166 = vst.msk [vmem:[%s2539_s18 + $0x18] sm:$0xff] %vm1086_vm2, %v1160_v43  ;;  %v1104_v45 = vpop.f32.mrf.mxu3  ;;  %1174 = vmax.xlane.f32.xlu2 %v1173_v44  ;;  %v1176_v46 = vsel %vm1086_vm2, %v1160_v43, -inf }
 0x1fc   : > { %1177 = vmax.xlane.f32.xlu1 %v1176_v46 }
 0x200   : > { %v1161_v47 = vpop.f32.mrf.mxu2 }
 0x20b   : > { %962 = vrot.lane.b32.xlu0 %v960_v51, %s2219_s11 }
 0x213   : > { %966 = vrot.lane.b32.xlu2 %v960_v51, %s2218_s21  ;;  %s2105_s21 = scalar_lea.hbm %s2773_s3, 64 }
 0x214   : > { %p2107_p8 = scmp.lt.s32.totalorder %s2105_s21, %s2101_s27 }
 0x215   : > { %964 = vrot.lane.b32.xlu1 %v960_v51, %s2220_s29 }
 0x216   : > { %p2108_p10 = por %p2107_p8, %p2106_p6 }
 0x218   : > { %p2109_p11 = pnand %p2108_p10, %p2104_p5 }
 0x266   : > { %v1172_v52 = vpop.xlane.xlu2 %1171 }
 0x267   : > { %v1180_v55 = vsub.f32 %v1122_v33, %v1172_v52 }
 0x269   : > { %v1185_v61 = vmul.f32 1.442695, %v1180_v55 }
 0x26a   : > { %v1169_v53 = vpop.xlane.xlu0 %1168 }
 0x26b   : > { %v1179_v54 = vsub.f32 %v1103_v38, %v1169_v53 }
 0x26d   : > { %v1183_v56 = vmul.f32 1.442695, %v1179_v54 }
 0x26e   : > { %v1175_v57 = vpop.xlane.xlu2 %1174 }
 0x26f   : > { %1889 = vpow2.f32 %v1183_v56  ;;  %v1181_v58 = vsub.f32 %v1141_v35, %v1175_v57  ;;  %v1178_v59 = vpop.xlane.xlu1 %1177 }
 0x270   : > { %v1182_v60 = vsub.f32 %v1160_v43, %v1178_v59 }
 0x271   : > { %v1187_v62 = vmul.f32 1.442695, %v1181_v58 }
 0x272   : > { %v1189_v63 = vmul.f32 1.442695, %v1182_v60 }
 0x273   : > { %1891 = vpow2.f32 %v1187_v62 }
 0x274   : > { %1893 = vpow2.f32 %v1189_v63 }
 0x275   : > { %v2559_v0 = vpop.eup %1889  ;;  %1895 = vpow2.f32 %v1185_v61 }
 0x276   : > { %v1191_v1 = vsel %vm1086_vm2, %v2559_v0, 0.0  ;;  %v967_v13 = vpop.permute.xlu2 %966 }
 0x277   : > { %1192 = vadd.xlane.f32.xlu0 %v1191_v1  ;;  %v978_v16 = vshrl.u32 %v967_v13, 16 }
 0x279   : > { %v2563_v2 = vpop.eup %1891 }
 0x27a   : > { %v2565_v3 = vpop.eup %1893  ;;  %v1197_v4 = vsel %vm1086_vm2, %v2563_v2, 0.0 }
 0x27b   : > { %v2569_v5 = vpop.eup %1895  ;;  %1198 = vadd.xlane.f32.xlu2 %v1197_v4  ;;  %v1200_v6 = vsel %vm1086_vm2, %v2565_v3, 0.0 }
 0x27c   : > { %1201 = vadd.xlane.f32.xlu1 %v1200_v6  ;;  %v1194_v8 = vsel %vm1086_vm2, %v2569_v5, 0.0 }
 0x27d   : > { %v963_v7 = vpop.permute.xlu0 %962 }
 0x27e   : > { %v972_v9 = vshrl.u32 %v963_v7, 16  ;;  %v970_v11 = vpack.i.b16 %v963_v7, %v960_v51 }
 0x27f   : > { %1195 = vadd.xlane.f32.xlu0 %v1194_v8 }
 0x280   : > { %v973_v12 = vpack.i.b16 %v972_v9, %v971_v10  ;;  %v984_v14 = vperm.slane %v970_v11, %v2464_v24 }
 0x282   : > { %v1010_v17 = vperm.slane %v973_v12, %v2464_v24  ;;  %v992_v20 = vrot.slane %v984_v14, 4 }
 0x284   : > { %v1018_v23 = vrot.slane %v1010_v17, 4 }
 0x287   : > { %v965_v15 = vpop.permute.xlu1 %964 }
 0x288   : > { %v976_v18 = vpack.i.b16 %v967_v13, %v965_v15  ;;  %v977_v19 = vshrl.u32 %v965_v15, 16 }
 0x28a   : > { %v979_v21 = vpack.i.b16 %v978_v16, %v977_v19  ;;  %v989_v22 = vperm.slane %v976_v18, %v2464_v24 }
 0x28c   : > { %v990_v25 = vrot.slane %v989_v22, 4  ;;  %v993_v26 = vsel %vm746_vm1, %v989_v22, %v992_v20  ;;  %v1015_v27 = vperm.slane %v979_v21, %v2464_v24 }
 0x28d   : > { %v1001_v28 = vperm.slane %v993_v26, %v2470_v49 }
 0x28e   : > { %v991_v29 = vsel %vm746_vm1, %v990_v25, %v984_v14  ;;  %v1016_v30 = vrot.slane %v1015_v27, 4  ;;  %v1019_v31 = vsel %vm746_vm1, %v1015_v27, %v1018_v23 }
 0x28f   : > { %v997_v32 = vperm.slane %v991_v29, %v2470_v49  ;;  %v1004_v33 = vrot.slane %v1001_v28, 4  ;;  %v1027_v34 = vperm.slane %v1019_v31, %v2470_v49 }
 0x290   : > { %v1017_v35 = vsel %vm746_vm1, %v1016_v30, %v1010_v17 }
 0x291   : > { %v1002_v36 = vrot.slane %v997_v32, 4  ;;  %v1005_v37 = vsel %vm746_vm1, 0, %v1004_v33  ;;  %v1023_v38 = vperm.slane %v1017_v35, %v2470_v49  ;;  %v1030_v39 = vrot.slane %v1027_v34, 4 }
 0x292   : > { %v1037_v40 = vrot.slane %v1005_v37, 4  ;;  %v1032_v45 = vsel %vm746_vm1, %v1004_v33, %v997_v32 }
 0x293   : > { %v1003_v41 = vsel %vm746_vm1, 0, %v1002_v36  ;;  %v1028_v42 = vrot.slane %v1023_v38, 4  ;;  %v1031_v43 = vsel %vm746_vm1, 0, %v1030_v39  ;;  %v1051_v50 = vsel %vm746_vm1, %v1030_v39, %v1023_v38 }
 0x294   : > { %v1056_v44 = vrot.slane %v1031_v43, 4  ;;  %v1038_v46 = vsel %vm746_vm1, %v1037_v40, %v1003_v41  ;;  %v1036_v52 = vperm.slane %v1032_v45, %v2464_v24  ;;  %v1055_v56 = vperm.slane %v1051_v50, %v2464_v24 }
 0x295   : > { %v1029_v47 = vsel %vm746_vm1, 0, %v1028_v42  ;;  %v1042_v48 = vperm.slane %v1038_v46, %v2464_v24 }
 0x296   : > { %v1057_v51 = vsel %vm746_vm1, %v1056_v44, %v1029_v47 }
 0x297   : > { %v1043_v53 = vrot.slane %v1042_v48, 4  ;;  %v1061_v54 = vperm.slane %v1057_v51, %v2464_v24 }
 0x299   : > { %v1044_v55 = vsel %vm746_vm1, %v1043_v53, %v1036_v52  ;;  %v1062_v57 = vrot.slane %v1061_v54, 4 }
 0x29a   : > { %v1048_v58 = vperm.slane %v1044_v55, %v2470_v49 }
 0x29b   : > { %v1063_v59 = vsel %vm746_vm1, %v1062_v57, %v1055_v56 }
 0x29c   : > { %v1067_v60 = vperm.slane %v1063_v59, %v2470_v49  ;;  %v1049_v61 = vrot.slane %v1048_v58, 4  ;;  %v1073_v62 = vshrl.u32 %v1048_v58, 16 }
 0x29e   : > { %v1072_v63 = vpack.i.b16 %v1067_v60, %v1048_v58  ;;  %v1074_v1 = vshrl.u32 %v1067_v60, 16  ;;  %v1050_v4 = vsel %vm746_vm1, 0, %v1049_v61  ;;  %v1068_v6 = vrot.slane %v1067_v60, 4 }
 0x29f   : > { %v1079_v11 = vshrl.u32 %v1050_v4, 16 }
 0x2a0   : > { %v1220_v7 = vsel %vm1218_vm3, %v1072_v63, 0  ;;  %v1075_v8 = vpack.i.b16 %v1074_v1, %v1073_v62  ;;  %v1069_v9 = vsel %vm746_vm1, 0, %v1068_v6 }
 0x2a1   : > { %1229 = vmatpush.bf16.msrb.mxu3 %v1220_v7  ;;  %v1078_v10 = vpack.i.b16 %v1069_v9, %v1050_v4  ;;  %v1080_v12 = vshrl.u32 %v1069_v9, 16 }
 0x2a2   : > { %v1239_v13 = vsel %vm1218_vm3, %v1075_v8, 0 }
 0x2a3   : > { %1248 = vmatpush.bf16.msra.mxu0 %v1239_v13  ;;  %v1258_v14 = vsel %vm1218_vm3, %v1078_v10, 0  ;;  %v1081_v15 = vpack.i.b16 %v1080_v12, %v1079_v11 }
 0x2a4   : > { %1267 = vmatpush.bf16.msra.mxu1 %v1258_v14 }
 0x2a5   : > { %v1277_v16 = vsel %vm1218_vm3, %v1081_v15, 0 }
 0x2a6   : > { %1286 = vmatpush.bf16.msra.mxu2 %v1277_v16 }
 0x2ea   : > { %v1193_v17 = vpop.xlane.xlu0 %1192 }
 0x2eb   : > { %1897 = vrcp.f32 %v1193_v17 }
 0x2ee   : > { %v1199_v18 = vpop.xlane.xlu2 %1198 }
 0x2ef   : > { %1899 = vrcp.f32 %v1199_v18  ;;  %v1202_v19 = vpop.xlane.xlu1 %1201 }
 0x2f0   : > { %1901 = vrcp.f32 %v1202_v19 }
 0x2f1   : > { %v1898_v20 = vpop.eup %1897 }
 0x2f2   : > { %v1207_v21 = vmul.f32 %v1898_v20, %v2559_v0  ;;  %v1196_v22 = vpop.xlane.xlu0 %1195 }
 0x2f3   : > { %1903 = vrcp.f32 %v1196_v22 }
 0x2f4   : > { %v1211_v23 = vpack.c.bf16 %v1207_v21, %v1207_v21 }
 0x2f5   : > { %v1900_v25 = vpop.eup %1899 }
 0x2f6   : > { %v1902_v26 = vpop.eup %1901  ;;  %v1209_v27 = vmul.f32 %v1900_v25, %v2563_v2  ;;  %1748 = vmatmul.msk.bf16.vlgmr.msrb.gmra.mxu3 %vm1086_vm2, %v1211_v23 }
 0x2f7   : > { %v1210_v28 = vmul.f32 %v1902_v26, %v2565_v3 }
 0x2f8   : > { %v1213_v29 = vpack.c.bf16 %v1209_v27, %v1209_v27 }
 0x2f9   : > { %v1904_v30 = vpop.eup %1903  ;;  %v1214_v31 = vpack.c.bf16 %v1210_v28, %v1210_v28 }
 0x2fa   : > { %v1208_v32 = vmul.f32 %v1904_v30, %v2569_v5  ;;  %1750 = vmatmul.msk.bf16.vlgmr.msra.gmra.mxu1 %vm1086_vm2, %v1213_v29 }
 0x2fb   : > { %1751 = vmatmul.msk.bf16.vlgmr.msra.gmra.mxu2 %vm1086_vm2, %v1214_v31 }
 0x2fc   : > { %v1212_v0 = vpack.c.bf16 %v1208_v32, %v1208_v32 }
 0x2fe   : > { %1749 = vmatmul.msk.bf16.vlgmr.msra.gmra.mxu0 %vm1086_vm2, %v1212_v0 }
 0x377   : > { %v1269_v33 = vpop.f32.mrf.mxu1 }
 0x378   : > { %v1292_v34 = vrot.slane %v1269_v33, 4 }
 0x379   : > { %v1231_v35 = vpop.f32.mrf.mxu3 }
 0x37a   : > { %v1295_v2 = vrot.slane %v1231_v35, 4  ;;  %v1294_v36 = vsel %vm746_vm1, %v1292_v34, %v1231_v35 }
 0x37b   : > { %v1250_v37 = vpop.f32.mrf.mxu0  ;;  %v1300_v5 = vperm.slane %v1294_v36, %v2464_v24 }
 0x37c   : > { %v1296_v3 = vsel %vm746_vm1, %v1269_v33, %v1295_v2  ;;  %v1307_v38 = vrot.slane %v1250_v37, 4 }
 0x37d   : > { %v1304_v39 = vperm.slane %v1296_v3, %v2464_v24  ;;  %v1319_v48 = vrot.slane %v1300_v5, 4 }
 0x37e   : > { %v1288_v40 = vpop.f32.mrf.mxu2 }
 0x37f   : > { %v1331_v41 = vrot.slane %v1304_v39, 4  ;;  %v1305_v42 = vrot.slane %v1288_v40, 4  ;;  %v1308_v43 = vsel %vm746_vm1, %v1288_v40, %v1307_v38  ;;  %v1271_v44 = vpop.f32.mrf.mxu1 }
 0x380   : > { %v1316_v45 = vperm.slane %v1308_v43, %v2464_v24 }
 0x381   : > { %v1306_v46 = vsel %vm746_vm1, %v1305_v42, %v1250_v37  ;;  %v1233_v47 = vpop.f32.mrf.mxu3 }
 0x382   : > { %v1312_v50 = vperm.slane %v1306_v46, %v2464_v24  ;;  %v1329_v51 = vrot.slane %v1316_v45, 4  ;;  %v1332_v52 = vsel %vm746_vm1, %v1316_v45, %v1331_v41 }
 0x383   : > { %v1340_v53 = vperm.slane %v1332_v52, %v2470_v49  ;;  %v1252_v54 = vpop.f32.mrf.mxu0 }
 0x384   : > { %v1317_v55 = vrot.slane %v1312_v50, 4  ;;  %v1320_v56 = vsel %vm746_vm1, %v1312_v50, %v1319_v48  ;;  %v1330_v57 = vsel %vm746_vm1, %v1329_v51, %v1304_v39 }
 0x385   : > { %v1328_v58 = vperm.slane %v1320_v56, %v2470_v49  ;;  %v1336_v59 = vperm.slane %v1330_v57, %v2470_v49  ;;  %v1347_v60 = vrot.slane %v1340_v53, 4 }
 0x386   : > { %v1318_v61 = vsel %vm746_vm1, %v1317_v55, %v1300_v5  ;;  %v1290_v62 = vpop.f32.mrf.mxu2 }
 0x387   : > { %v1324_v63 = vperm.slane %v1318_v61, %v2470_v49  ;;  %v1343_v1 = vrot.slane %v1328_v58, 4  ;;  %v1345_v4 = vrot.slane %v1336_v59, 4  ;;  %v1348_v6 = vsel %vm746_vm1, 0.0, %v1347_v60 }
 0x388   : > { %v1360_v7 = vsel %vm746_vm1, %v1347_v60, %v1336_v59  ;;  %v1365_v8 = vrot.slane %v1348_v6, 4 }
 0x389   : > { %v1341_v9 = vrot.slane %v1324_v63, 4  ;;  %v1344_v10 = vsel %vm746_vm1, 0.0, %v1343_v1  ;;  %v1346_v11 = vsel %vm746_vm1, 0.0, %v1345_v4  ;;  %v1364_v12 = vperm.slane %v1360_v7, %v2464_v24 }
 0x38a   : > { %v1354_v13 = vrot.slane %v1344_v10, 4  ;;  %v1349_v14 = vsel %vm746_vm1, %v1343_v1, %v1324_v63  ;;  %v1366_v15 = vsel %vm746_vm1, %v1365_v8, %v1346_v11 }
 0x38b   : > { %v1342_v16 = vsel %vm746_vm1, 0.0, %v1341_v9  ;;  %v1353_v17 = vperm.slane %v1349_v14, %v2464_v24  ;;  %v1370_v18 = vperm.slane %v1366_v15, %v2464_v24  ;;  %v1385_v19 = vrot.slane %v1364_v12, 4 }
 0x38c   : > { %v1355_v20 = vsel %vm746_vm1, %v1354_v13, %v1342_v16 }
 0x38d   : > { %v1359_v21 = vperm.slane %v1355_v20, %v2464_v24  ;;  %v1373_v22 = vrot.slane %v1353_v17, 4  ;;  %v1386_v23 = vsel %vm746_vm1, %v1370_v18, %v1385_v19  ;;  %v1383_v25 = vrot.slane %v1370_v18, 4 }
 0x38e   : > { %v1394_v26 = vperm.slane %v1386_v23, %v2470_v49 }
 0x38f   : > { %v1374_v27 = vsel %vm746_vm1, %v1359_v21, %v1373_v22  ;;  %v1371_v28 = vrot.slane %v1359_v21, 4  ;;  %v1384_v29 = vsel %vm746_vm1, %v1383_v25, %v1364_v12 }
 0x390   : > { %v1382_v30 = vperm.slane %v1374_v27, %v2470_v49  ;;  %v1399_v31 = vrot.slane %v1394_v26, 4  ;;  %v1390_v32 = vperm.slane %v1384_v29, %v2470_v49 }
 0x391   : > { %v1372_v24 = vsel %vm746_vm1, %v1371_v28, %v1353_v17 }
 0x392   : > { %v1400_v0 = vsel %vm746_vm1, %v1399_v31, %v1382_v30  ;;  %v1401_v33 = vrot.slane %v1382_v30, 4  ;;  %v1378_v34 = vperm.slane %v1372_v24, %v2470_v49  ;;  %v1395_v35 = vrot.slane %v1390_v32, 4 }
 0x393   : > { %1408 = vrot.lane.b32.xlu0 %v1400_v0, %s2223_s7 }
 0x394   : > { %v1402_v2 = vsel %vm746_vm1, %v1394_v26, %v1401_v33  ;;  %v1397_v36 = vrot.slane %v1378_v34, 4  ;;  %v1396_v37 = vsel %vm746_vm1, %v1395_v35, %v1378_v34 }
 0x395   : > { %1412 = vrot.lane.b32.xlu2 %v1402_v2, %s2224_s15 }
 0x396   : > { %v1398_v3 = vsel %vm746_vm1, %v1390_v32, %v1397_v36 }
 0x397   : > { %2112 = shalt.err (!%p2109_p11)
}
 0x398   : > { %s2225_s22 = smov 128   ;;  %s2226_s18 = smov 8   ;;  %vm1416_vm4 = vcmask 130048   ;;  %vm1418_vm5 = vcmask 195584  }
 0x399   : > { %1785 = dma.vmem_to_hbm [thread:$0]  (%p2362_p4), %s2650_s10, 512, %s1461_s8, %s1427_s16, %s2225_s22, %s2225_s22, %s2226_s18  }
 0x39a   : > { %1404 = vrot.lane.b32.xlu1 %v1398_v3, %s2226_s18  ;;  %s1715_s25 = sshll.u32 %s2427_s1, 3  ;;  %s1754_s12 = sshll.u32 %s2772_s9, 3 }
 0x39b   : > { %s2775_s26 = sld [smem:[#allocation35_spill]]  ;;  %s588_s5 = scalar_lea.vmem [#allocation13], %s1715_s25 }
 0x39c   : > { %s1441_s7 = sshll.u32 %s588_s5, 4  ;;  %s1422_s9 = scalar_lea.sflag [#allocation4], %s2427_s1  ;;  %s1442_s7 = int_to_ptr.vmem [resolvable:$true] %s1441_s7 }
 0x3a1   : > { %s1439_s13 = scalar_lea.hbm %s2775_s26, %s1754_s12  ;;  %s2133_s27 = scalar_lea.hbm %s2775_s26, 16 }
 0x3a2   : > { %s1443_s15 = sshll.u32 %s1439_s13, 4  ;;  %s1444_s15 = int_to_ptr.hbm [resolvable:$true] %s1443_s15 }
 0x3a3   : > { %s2127_s10 = sshra.s32 %s1444_s15, 4  ;;  %s2128_s10 = int_to_ptr.hbm [resolvable:$true] %s2127_s10 }
 0x3a4   : > { %s2129_s8 = scalar_lea.hbm %s2128_s10, 8  ;;  %p2134_p2 = scmp.lt.s32.totalorder %s2128_s10, %s2775_s26 }
 0x3a5   : > { %p2130_p12 = scmp.ne.s32.totalorder %s2128_s10, %s2129_s8  ;;  %p2135_p7 = scmp.lt.s32.totalorder %s2133_s27, %s2129_s8 }
 0x3a7   : > { %p2131_p13 = pnand %p2130_p12, %p2362_p4  ;;  %p2136_p1 = por %p2135_p7, %p2134_p2 }
 0x3a9   : > { %p2132_p0 = pneg %p2131_p13 }
 0x3ab   : > { %p2137_p3 = pnand %p2136_p1, %p2132_p0 }
 0x3ef   : > { %v1413_v5 = vpop.permute.xlu2 %1412 }
 0x405   : > { %v1409_v38 = vpop.permute.xlu0 %1408 }
 0x40c   : > { %v1405_v49 = vpop.permute.xlu1 %1404 }
 0x40d   : > { %v1415_v39 = vsel %vm1086_vm2, %v1396_v37, %v1405_v49 }
 0x40e   : > { %v1417_v40 = vsel %vm1416_vm4, %v1415_v39, %v1409_v38 }
 0x40f   : > { %v1419_v41 = vsel %vm1418_vm5, %v1417_v40, %v1413_v5 }
 0x410   : > { %1420 = vst.msk [vmem:[%s588_s5] sm:$0xff] %vm629_vm0, %v1419_v41 }
 0x411   : > { %2140 = shalt.err (!%p2137_p3)
}
 0x412   : > { %1784 = dma.vmem_to_hbm [thread:$0]  (%p2362_p4), %s1442_s7, 128, %s1444_s15, %s1422_s9  }
 0x413 PF: > { %s2776_s1 = sld [smem:[#allocation22_spill]] }
 0x414   : > { %s2778_s11 = sld [smem:[#allocation25_spill]] }
 0x419   : > { %s1475_s29 = sand.u32 1, %s2776_s1  }
 0x41a   : > { %p2779_p5 = scmp.ge.s32.totalorder %s2778_s11, 2  ;;  %s1476_s22 = scalar_lea.sflag [#allocation4], %s1475_s29 }
 0x41c   : > { %p1809_p6 = pnand %p2779_p5, %p2370_p9 }
 0x41e   : > { %p1810_p8 = pneg %p1809_p6 }
 0x420   : > { %2182 = dma.done.wait (%p1810_p8), %s1476_s22, 128  }
 0x421   : > { %2184 = vsyncadd (%p1810_p8), %s1476_s22, 4294967168  ;;  %s1486_s18 = scalar_lea.sflag [#allocation15], %s1475_s29 }
 0x422   : > { %2186 = dma.done.wait (%p1810_p8), %s1486_s18, 512  }
 0x423   : > { %2188 = vsyncadd (%p1810_p8), %s1486_s18, 4294966784  ;;  %s35_s18 = sadd.s32 1, %s2778_s11   ;;  %s2780_s28 = sld [smem:[#allocation23_spill]] }
 0x424   : > { %p32_p10 = scmp.ge.s32.totalorder %s35_s18, 4   ;;  %s2781_s15 = sld [smem:[#allocation28_spill]] }
 0x425   : > { %s2782_s25 = sld [smem:[#allocation26_spill]]  ;;  %s2783_s13 = smov %s2195_s14 }
 0x426   : > { %s2785_s16 = smov %s2207_s17 }
 0x427   :  { %34 = sbr.rel (!%p32_p10) target bundleno = 20 (0x14), region = 166 }
 0x429   : > { %s2784_s14 = smov %s2780_s28 }
 0x42b   : > { %s2786_s17 = smov %s2782_s25 }
 0x42c   :  { %1492 = vsyncpa [#allocation3], 1 }
 0x42d   :  { %1494 = vsyncpa [#allocation3 + $0x1], 1 }
 0x42e   :  { %1495 = vsyncpa [#allocation6], 1 }
 0x42f   :  { %1497 = vsyncpa [#allocation6 + $0x1], 1 }
 0x430   :  { %1498 = vsyncpa [#allocation9], 1 }
 0x431   :  { %1499 = vsyncpa [#allocation12], 1 }
 0x432   :  { %1500 = vsyncpa [#allocation4], 1 }
 0x433   :  { %1502 = vsyncpa [#allocation4 + $0x1], 1 }
 0x434   :  { %1503 = vsyncpa [#allocation15], 1 }
 0x435   :  { %1505 = vsyncpa [#allocation15 + $0x1], 1 }

</bundles_post_ra>
